<compile_context>
chip_gen: v5e
topology: v5e:2x2
jax: 0.10.0
libtpu: 0.0.40
codegen_flags: <defaults>
</compile_context>

<pallas_src>
import functools

import numpy as np
import jax
import jax.numpy as jnp
from jax.experimental import pallas as pl
from jax.experimental.pallas import tpu as pltpu

BN_EPS = 1e-5           # nn.BatchNorm2d default eps
LRELU_SLOPE = 0.3       # ConvBlock default negative_slope


# ----------------------------------------------------------------------------
# Pallas kernel: fused conv-as-matmul + BatchNorm(batch stats) + LeakyReLU
# ----------------------------------------------------------------------------
def _conv_bn_lrelu_kernel(x_ref, w_ref, g_ref, beta_ref, o_ref, *, slope):
    # x_ref:    (K, N)      im2col slab, K = k*k*Cin, N = B*Ho*Wo on lanes
    # w_ref:    (Cout, K)   reshaped conv weight
    # g_ref:    (Cout, 1)   BN gamma
    # beta_ref: (Cout, 1)   BN beta
    # o_ref:    (Cout, N)   lane-dense output
    acc = jnp.dot(w_ref[...], x_ref[...],
                  preferred_element_type=jnp.float32)         # single MXU matmul
    n = acc.shape[-1]
    inv_n = 1.0 / n

    # BatchNorm2d batch statistics over (N, H, W): per-channel lane reductions,
    # computed in one pass (sum + sum of squares) over the accumulator.
    s1 = jnp.sum(acc, axis=-1, keepdims=True)
    s2 = jnp.sum(acc * acc, axis=-1, keepdims=True)
    mu = s1 * inv_n
    var = jnp.maximum(s2 * inv_n - mu * mu, 0.0)              # biased, like torch
    scale = g_ref[...] * jax.lax.rsqrt(var + BN_EPS)          # gamma folded into scale

    y = (acc - mu) * scale + beta_ref[...]
    o_ref[...] = jnp.where(y >= 0, y, slope * y)              # LeakyReLU(slope)


# ----------------------------------------------------------------------------
# Wrapper: NCHW ConvBlock forward
# ----------------------------------------------------------------------------
def conv_block(x, params, *, kernel=3, stride=1, padding=1,
               slope=LRELU_SLOPE, matmul_dtype=jnp.bfloat16):
    """ConvBlock.forward: Conv2d(k, stride, pad) + BatchNorm2d + LeakyReLU(slope).

    x: (B, Cin, H, W). params: {"w": (Cout, Cin, k, k), "b": (Cout,),
    "gamma": (Cout,), "beta": (Cout,)}.
    """
    b, cin, h, w = x.shape
    cout = params["w"].shape[0]
    k = kernel
    ho = (h + 2 * padding - k) // stride + 1
    wo = (w + 2 * padding - k) // stride + 1
    n = b * ho * wo

    # --- wrapper-side layout glue: im2col slab in lane-dense (K, N) layout ---
    xp = jnp.pad(x, ((0, 0), (0, 0), (padding, padding), (padding, padding)))
    taps = [xp[:, :, dy:dy + (ho - 1) * stride + 1:stride,
                     dx:dx + (wo - 1) * stride + 1:stride]
            for dy in range(k) for dx in range(k)]             # each (B,Cin,Ho,Wo)
    slab = (jnp.stack(taps, 0)                                  # (k*k, B, Cin, Ho, Wo)
            .transpose(0, 2, 1, 3, 4)                           # (k*k, Cin, B, Ho, Wo)
            .reshape(k * k * cin, n)                            # (K, N)
            .astype(matmul_dtype))
    w_mat = (params["w"].transpose(0, 2, 3, 1)                  # (Cout, k, k, Cin)
             .reshape(cout, k * k * cin)                        # (Cout, K), same K order
             .astype(matmul_dtype))
    gamma = params["gamma"].reshape(cout, 1).astype(jnp.float32)
    beta = params["beta"].reshape(cout, 1).astype(jnp.float32)
    # NOTE: params["b"] (conv bias) is intentionally not passed to the kernel:
    # with batch-statistics BatchNorm it is exactly cancelled by the mean
    # subtraction, so adding it would be a dead broadcast add per layer.

    out = pl.pallas_call(
        functools.partial(_conv_bn_lrelu_kernel, slope=slope),
        out_shape=jax.ShapeDtypeStruct((cout, n), jnp.float32),
        in_specs=[pl.BlockSpec(memory_space=pltpu.MemorySpace.VMEM)] * 4,
        out_specs=pl.BlockSpec(memory_space=pltpu.MemorySpace.VMEM),
    )(slab, w_mat, gamma, beta)

    return out.reshape(cout, b, ho, wo).transpose(1, 0, 2, 3)   # (B, Cout, Ho, Wo)


# ----------------------------------------------------------------------------
# Pure-JAX f32 reference (for correctness check)
# ----------------------------------------------------------------------------
def conv_block_ref(x, params, *, kernel=3, stride=1, padding=1, slope=LRELU_SLOPE):
    out = jax.lax.conv_general_dilated(
        x, params["w"], window_strides=(stride, stride),
        padding=[(padding, padding), (padding, padding)],
        dimension_numbers=("NCHW", "OIHW", "NCHW"))
    out = out + params["b"][None, :, None, None]
    mu = jnp.mean(out, axis=(0, 2, 3), keepdims=True)
    var = jnp.mean((out - mu) ** 2, axis=(0, 2, 3), keepdims=True)
    y = (out - mu) * (params["gamma"][None, :, None, None]
                      * jax.lax.rsqrt(var + BN_EPS)) + params["beta"][None, :, None, None]
    return jnp.where(y >= 0, y, slope * y)


# ----------------------------------------------------------------------------
# Parameters (deterministic, PyTorch-default-style init)
# ----------------------------------------------------------------------------
def init_conv_block(key, cin, cout, kernel=3):
    k1, k2 = jax.random.split(key)
    bound = 1.0 / np.sqrt(cin * kernel * kernel)   # fan_in = cin*k*k
    return {
        "w": jax.random.uniform(k1, (cout, cin, kernel, kernel), jnp.float32,
                                -bound, bound),
        "b": jax.random.uniform(k2, (cout,), jnp.float32, -bound, bound),
        "gamma": jnp.ones((cout,), jnp.float32),   # BN weight init
        "beta": jnp.zeros((cout,), jnp.float32),   # BN bias init
    }


if __name__ == "__main__":
    key = jax.random.PRNGKey(0)
    kx, kp = jax.random.split(key)

    # ConvBlock(inf=4, outf=16, kernel=3, stride=1, padding=1) on a small input.
    B, Cin, H, W = 2, 4, 16, 16
    Cout = 16
    x = jax.random.uniform(kx, (B, Cin, H, W), jnp.float32)
    params = init_conv_block(kp, Cin, Cout, kernel=3)

    fwd = jax.jit(functools.partial(conv_block, kernel=3, stride=1, padding=1))
    y = fwd(x, params)
    jax.block_until_ready(y)

    assert y.shape == (B, Cout, H, W) and y.dtype == jnp.float32
    assert bool(jnp.all(jnp.isfinite(y)))

    # Correctness vs pure-JAX f32 reference (tolerance covers bf16 matmul inputs
    # and the algebraically-cancelled conv bias).
    y_ref = conv_block_ref(x, params)
    err = float(jnp.max(jnp.abs(y - y_ref)))
    assert err < 1e-1, f"max abs error {err}"

    print("KERNEL_OK")
</pallas_src>

<mosaic_0001>
module attributes {stable_mosaic.version = 11 : i64} {
  func.func @_conv_bn_lrelu_kernel(%arg0: memref<36x512xbf16, #tpu.memory_space<vmem>>, %arg1: memref<16x36xbf16, #tpu.memory_space<vmem>>, %arg2: memref<16x1xf32, #tpu.memory_space<vmem>>, %arg3: memref<16x1xf32, #tpu.memory_space<vmem>>, %arg4: memref<16x512xf32, #tpu.memory_space<vmem>>) attributes {dimension_semantics = [], scalar_prefetch = 0 : i64, scratch_operands = 0 : i64, tpu.core_type = #tpu.core_type<tc>} {
    %c0 = arith.constant 0 : index
    %c0_0 = arith.constant 0 : index
    %0 = vector.load %arg1[%c0, %c0_0] : memref<16x36xbf16, #tpu.memory_space<vmem>>, vector<16x36xbf16>
    %c0_1 = arith.constant 0 : index
    %c0_2 = arith.constant 0 : index
    %1 = vector.load %arg0[%c0_1, %c0_2] : memref<36x512xbf16, #tpu.memory_space<vmem>>, vector<36x512xbf16>
    %cst = arith.constant dense<0.000000e+00> : vector<16x512xf32>
    %2 = tpu.matmul %0, %1, %cst {dimension_numbers = #tpu.dot_dimension_numbers<[1], [0], [0], [1], [0, 0, 1, 1], [], []>} : vector<16x36xbf16>, vector<36x512xbf16>, vector<16x512xf32> -> vector<16x512xf32>
    %cst_3 = arith.constant dense<0.000000e+00> : vector<16xf32>
    %3 = vector.multi_reduction <add>, %2, %cst_3 [1] : vector<16x512xf32> to vector<16xf32>
    %4 = vector.shape_cast %3 : vector<16xf32> to vector<16x1xf32>
    %5 = arith.mulf %2, %2 : vector<16x512xf32>
    %cst_4 = arith.constant dense<0.000000e+00> : vector<16xf32>
    %6 = vector.multi_reduction <add>, %5, %cst_4 [1] : vector<16x512xf32> to vector<16xf32>
    %7 = vector.shape_cast %6 : vector<16xf32> to vector<16x1xf32>
    %cst_5 = arith.constant 0.001953125 : f32
    %8 = vector.broadcast %cst_5 : f32 to vector<16x1xf32>
    %9 = arith.mulf %4, %8 : vector<16x1xf32>
    %cst_6 = arith.constant 0.001953125 : f32
    %10 = vector.broadcast %cst_6 : f32 to vector<16x1xf32>
    %11 = arith.mulf %7, %10 : vector<16x1xf32>
    %12 = arith.mulf %9, %9 : vector<16x1xf32>
    %13 = arith.subf %11, %12 : vector<16x1xf32>
    %cst_7 = arith.constant 0.000000e+00 : f32
    %14 = vector.broadcast %cst_7 : f32 to vector<16x1xf32>
    %15 = arith.maximumf %13, %14 : vector<16x1xf32>
    %c0_8 = arith.constant 0 : index
    %c0_9 = arith.constant 0 : index
    %16 = vector.load %arg2[%c0_8, %c0_9] : memref<16x1xf32, #tpu.memory_space<vmem>>, vector<16x1xf32>
    %cst_10 = arith.constant 9.99999974E-6 : f32
    %17 = vector.broadcast %cst_10 : f32 to vector<16x1xf32>
    %18 = arith.addf %15, %17 : vector<16x1xf32>
    %19 = math.rsqrt %18 : vector<16x1xf32>
    %20 = arith.mulf %16, %19 : vector<16x1xf32>
    %21 = vector.broadcast %9 : vector<16x1xf32> to vector<16x512xf32>
    %22 = arith.subf %2, %21 : vector<16x512xf32>
    %23 = vector.broadcast %20 : vector<16x1xf32> to vector<16x512xf32>
    %24 = arith.mulf %22, %23 : vector<16x512xf32>
    %c0_11 = arith.constant 0 : index
    %c0_12 = arith.constant 0 : index
    %25 = vector.load %arg3[%c0_11, %c0_12] : memref<16x1xf32, #tpu.memory_space<vmem>>, vector<16x1xf32>
    %26 = vector.broadcast %25 : vector<16x1xf32> to vector<16x512xf32>
    %27 = arith.addf %24, %26 : vector<16x512xf32>
    %cst_13 = arith.constant 0.000000e+00 : f32
    %28 = vector.broadcast %cst_13 : f32 to vector<16x512xf32>
    %29 = arith.cmpf oge, %27, %28 : vector<16x512xf32>
    %cst_14 = arith.constant 3.000000e-01 : f32
    %30 = vector.broadcast %cst_14 : f32 to vector<16x512xf32>
    %31 = arith.mulf %30, %27 : vector<16x512xf32>
    %32 = arith.select %29, %27, %31 : vector<16x512xi1>, vector<16x512xf32>
    %c0_15 = arith.constant 0 : index
    %c0_16 = arith.constant 0 : index
    %33 = vector.load %arg4[%c0_15, %c0_16] : memref<16x512xf32, #tpu.memory_space<vmem>>, vector<16x512xf32>
    tpu.vector_store %arg4[%c0_15, %c0_16], %32 {strides = array<i32>} : memref<16x512xf32, #tpu.memory_space<vmem>>, vector<16x512xf32>,
    return
  }
}

</mosaic_0001>

<bundles_post_ra>
// kernel: conv_block.1
= control target key start
LH: loop header
LB: loop body
LE: loop exit
PB: predicated region body
PF: predicated region fallthrough
CT: control target
= control target key end

     0   :  { %vm89_vm0 = vcmask 1041408   ;;  %vm85_vm1 = vcmask 293888   ;;  %s540_s0 = inlined_call_operand.vmem [shape: bf16[36,512], index: 0, kind: input, shape index: {}]   ;;  %s541_s1 = inlined_call_operand.vmem [shape: bf16[16,36], index: 1, kind: input, shape index: {}]   ;;  %s542_s3 = inlined_call_operand.vmem [shape: f32[16,1], index: 3, kind: input, shape index: {}]   ;;  %s543_s2 = inlined_call_operand.vmem [shape: f32[16,1], index: 2, kind: input, shape index: {}]   ;;  %s544_s4 = inlined_call_operand.vmem [shape: f32[16,512], index: 4, kind: output, shape index: {}]  }
   0x1   :  { %v28_v0 = vld [vmem:[%s540_s0 + $0x40] sm:$0x33]  ;;  %v29_v1 = vld [vmem:[%s540_s0 + $0x48] sm:$0x33]  ;;  %v351_v7 = vld [vmem:[%s540_s0 + $0x2c] sm:$0xf0] }
   0x2   :  { %v61_v2 = vunpack.c.l.b16 %v28_v0  ;;  %v62_v3 = vunpack.c.h.b16 %v28_v0  ;;  %v63_v4 = vunpack.c.l.b16 %v29_v1  ;;  %v64_v5 = vunpack.c.h.b16 %v29_v1  ;;  %v326_v6 = vld [vmem:[%s540_s0 + $0x20] sm:$0xf]  ;;  %v349_v12 = vld [vmem:[%s540_s0 + $0x24] sm:$0xf]  ;;  %v328_v13 = vld [vmem:[%s540_s0 + $0x30] sm:$0xf0] }
   0x3   :  { %v334_v14 = vld [vmem:[%s540_s0 + $0x28] sm:$0xf]  ;;  %v352_v15 = vld [vmem:[%s540_s0 + $0x34] sm:$0xf0]  ;;  %v350_v16 = vld [vmem:[%s540_s0 + $0x2c] sm:$0xf]  ;;  %v327_v22 = vor.u32 %v351_v7, %v326_v6  ;;  %v331_v23 = vor.u32 %v349_v12, %v328_v13 }
   0x4   :  { %v73_v8 = vpack.c.b16 %v61_v2, %v61_v2  ;;  %v74_v9 = vpack.c.b16 %v62_v3, %v62_v3  ;;  %v75_v10 = vpack.c.b16 %v63_v4, %v63_v4  ;;  %v76_v11 = vpack.c.b16 %v64_v5, %v64_v5  ;;  %v336_v17 = vld [vmem:[%s540_s0 + $0x38] sm:$0xf0]  ;;  %v310_v24 = vld [vmem:[%s540_s0] sm:$0xf]  ;;  %v347_v25 = vld [vmem:[%s540_s0 + $0xc] sm:$0xf0] }
   0x5   :  { %v335_v26 = vor.u32 %v352_v15, %v334_v14  ;;  %v339_v27 = vor.u32 %v350_v16, %v336_v17  ;;  %v345_v28 = vld [vmem:[%s540_s0 + $0x4] sm:$0xf]  ;;  %v312_v29 = vld [vmem:[%s540_s0 + $0x10] sm:$0xf0]  ;;  %v318_v30 = vld [vmem:[%s540_s0 + $0x8] sm:$0xf]  ;;  %v311_v34 = vor.u32 %v347_v25, %v310_v24 }
   0x6   :  { %v91_v18 = vsel %vm89_vm0, %v73_v8, 0  ;;  %v94_v19 = vsel %vm89_vm0, %v74_v9, 0  ;;  %v97_v20 = vsel %vm89_vm0, %v75_v10, 0  ;;  %v100_v21 = vsel %vm89_vm0, %v76_v11, 0  ;;  %v348_v31 = vld [vmem:[%s540_s0 + $0x14] sm:$0xf0] }
   0x7   :  { %107 = vmatpush.bf16.msra.mxu0 %v91_v18  ;;  %121 = vmatpush.bf16.msra.mxu1 %v94_v19  ;;  %v346_v32 = vld [vmem:[%s540_s0 + $0xc] sm:$0xf]  ;;  %v320_v33 = vld [vmem:[%s540_s0 + $0x18] sm:$0xf0]  ;;  %v315_v35 = vor.u32 %v345_v28, %v312_v29  ;;  %v319_v36 = vor.u32 %v348_v31, %v318_v30  ;;  %v344_v38 = vld [vmem:[%s541_s1] sm:$0xff]  ;;  %v361_v3 = vmov 0  }
   0x8   :  { %135 = vmatpush.bf16.msra.mxu2 %v97_v20  ;;  %149 = vmatpush.bf16.msra.mxu3 %v100_v21  ;;  %v323_v37 = vor.u32 %v346_v32, %v320_v33  ;;  %v248_v4 = vld [vmem:[%s542_s3] sm:$0xff]  ;;  %v249_v5 = vld [vmem:[%s542_s3 + $0x8] sm:$0xff] }
   0x9   :  { %355 = vset.pattern.permute.xlu0 %v361_v3  ;;  %356 = vset.pattern.permute.xlu1 %v361_v3  ;;  %v196_v29 = vld [vmem:[%s543_s2] sm:$0xff] }
   0xa   :  { %354 = vset.pattern.permute.xlu2 %v361_v3 }
   0xb   :  { %108 = vmatpush.bf16.msra.mxu0 %v327_v22  ;;  %122 = vmatpush.bf16.msra.mxu1 %v331_v23 }
   0xc   :  { %136 = vmatpush.bf16.msra.mxu2 %v335_v26  ;;  %150 = vmatpush.bf16.msra.mxu3 %v339_v27 }
   0xf   :  { %109 = vmatpush.bf16.msra.mxu0 %v311_v34  ;;  %123 = vmatpush.bf16.msra.mxu1 %v315_v35 }
  0x10   :  { %137 = vmatpush.bf16.msra.mxu2 %v319_v36  ;;  %151 = vmatpush.bf16.msra.mxu3 %v323_v37  ;;  %v197_v36 = vld [vmem:[%s543_s2 + $0x8] sm:$0xff] }
  0x12   :  { %340 = vmatmul.msk.bf16.vlgmr.msra.gmra.mxu0 %vm85_vm1, %v344_v38  ;;  %341 = vmatmul.msk.bf16.vlgmr.msra.gmra.mxu1 %vm85_vm1, %v344_v38 }
  0x13   :  { %342 = vmatmul.msk.bf16.vlgmr.msra.gmra.mxu2 %vm85_vm1, %v344_v38  ;;  %343 = vmatmul.msk.bf16.vlgmr.msra.gmra.mxu3 %vm85_vm1, %v344_v38 }
  0x8f   :  { %v448_v39 = vpop.f32.mrf.mxu0  ;;  %v450_v40 = vpop.f32.mrf.mxu1 }
  0x90   :  { %v168_v41 = vmul.f32 %v448_v39, %v448_v39  ;;  %v169_v42 = vmul.f32 %v450_v40, %v450_v40  ;;  %v158_v43 = vadd.f32 %v450_v40, %v448_v39 }
  0x92   :  { %v176_v44 = vadd.f32 %v169_v42, %v168_v41 }
  0x96   :  { %v458_v45 = vpop.f32.mrf.mxu2  ;;  %v460_v46 = vpop.f32.mrf.mxu3 }
  0x97   :  { %v170_v47 = vmul.f32 %v458_v45, %v458_v45  ;;  %v159_v48 = vadd.f32 %v158_v43, %v458_v45  ;;  %v171_v49 = vmul.f32 %v460_v46, %v460_v46  ;;  %v467_v50 = vpop.f32.mrf.mxu0  ;;  %v469_v51 = vpop.f32.mrf.mxu1 }
  0x98   :  { %v172_v54 = vmul.f32 %v467_v50, %v467_v50  ;;  %v173_v55 = vmul.f32 %v469_v51, %v469_v51  ;;  %v163_v57 = vadd.f32 %v469_v51, %v467_v50 }
  0x99   :  { %v160_v52 = vadd.f32 %v159_v48, %v460_v46  ;;  %v177_v53 = vadd.f32 %v176_v44, %v170_v47 }
  0x9a   :  { %v181_v60 = vadd.f32 %v173_v55, %v172_v54 }
  0x9b   :  { %161 = vadd.xlane.f32.xlu0 %v160_v52  ;;  %v178_v56 = vadd.f32 %v177_v53, %v171_v49 }
  0x9d   :  { %179 = vadd.xlane.f32.xlu1 %v178_v56 }
  0x9e   :  { %v478_v58 = vpop.f32.mrf.mxu2  ;;  %v480_v59 = vpop.f32.mrf.mxu3 }
  0x9f   :  { %v164_v61 = vadd.f32 %v163_v57, %v478_v58  ;;  %v174_v62 = vmul.f32 %v478_v58, %v478_v58  ;;  %v175_v63 = vmul.f32 %v480_v59, %v480_v59 }
  0xa1   :  { %v165_v0 = vadd.f32 %v164_v61, %v480_v59  ;;  %v182_v1 = vadd.f32 %v181_v60, %v174_v62 }
  0xa3   :  { %166 = vadd.xlane.f32.xlu0 %v165_v0  ;;  %v183_v2 = vadd.f32 %v182_v1, %v175_v63 }
  0xa5   :  { %184 = vadd.xlane.f32.xlu1 %v183_v2 }
  0xb7   :  { %252 = vperm.xlu0 %355, %v248_v4  }
  0xbe   :  { %257 = vperm.xlu1 %356, %v249_v5  }
 0x10e   :  { %v162_v6 = vpop.xlane.xlu0 %161 }
 0x10f   :  { %v186_v7 = vmul.f32 0.001953125, %v162_v6 }
 0x110   :  { %v180_v8 = vpop.xlane.xlu1 %179 }
 0x111   :  { %v188_v9 = vmul.f32 0.001953125, %v180_v8  ;;  %v190_v10 = vmul.f32 %v186_v7, %v186_v7  ;;  %v222_v42 = vsub.f32 %v448_v39, %v186_v7  ;;  %v223_v43 = vsub.f32 %v450_v40, %v186_v7 }
 0x112   :  { %v224_v44 = vsub.f32 %v458_v45, %v186_v7  ;;  %v225_v47 = vsub.f32 %v460_v46, %v186_v7 }
 0x113   :  { %v192_v11 = vsub.f32 %v188_v9, %v190_v10 }
 0x115   :  { %v194_v12 = vmax.f32 %v192_v11, 0.0 }
 0x116   :  { %v167_v13 = vpop.xlane.xlu0 %166 }
 0x117   :  { %v198_v14 = vadd.f32 1e-05, %v194_v12  ;;  %v494_v15 = vmul.f32 0.001953125, %v167_v13 }
 0x118   :  { %v185_v16 = vpop.xlane.xlu1 %184 }
 0x119   :  { %357 = vrsqrt.f32 %v198_v14  ;;  %v189_v17 = vmul.f32 0.001953125, %v185_v16  ;;  %v191_v18 = vmul.f32 %v494_v15, %v494_v15  ;;  %vm206_vm3 = vweird.f32 %v198_v14 }
 0x11a   :  { %v226_v46 = vsub.f32 %v467_v50, %v494_v15  ;;  %v227_v63 = vsub.f32 %v469_v51, %v494_v15  ;;  %v228_v0 = vsub.f32 %v478_v58, %v494_v15  ;;  %v229_v4 = vsub.f32 %v480_v59, %v494_v15 }
 0x11b   :  { %v193_v19 = vsub.f32 %v189_v17, %v191_v18 }
 0x11d   :  { %v195_v20 = vmax.f32 %v193_v19, 0.0 }
 0x11f   :  { %v358_v21 = vpop.eup %357  ;;  %v199_v22 = vadd.f32 1e-05, %v195_v20 }
 0x120   :  { %v201_v23 = vmul.f32 %v358_v21, %v198_v14  ;;  %vm207_vm2 = vweird.f32 %v358_v21 }
 0x121   :  { %359 = vrsqrt.f32 %v199_v22  ;;  %vm208_vm4 = vmor %vm206_vm3, %vm207_vm2  ;;  %vm216_vm6 = vweird.f32 %v199_v22 }
 0x122   :  { %v202_v24 = vmul.f32 %v358_v21, %v201_v23 }
 0x124   :  { %v203_v25 = vmul.f32 0.5, %v202_v24 }
 0x126   :  { %v204_v26 = vsub.f32 1.5, %v203_v25 }
 0x127   :  { %v360_v27 = vpop.eup %359 }
 0x128   :  { %v211_v28 = vmul.f32 %v360_v27, %v199_v22  ;;  %v205_v30 = vmul.f32 %v358_v21, %v204_v26  ;;  %vm217_vm5 = vweird.f32 %v360_v27 }
 0x129   :  { %vm218_vm7 = vmor %vm216_vm6, %vm217_vm5  ;;  %v253_v49 = vpop.permute.xlu0 %252 }
 0x12a   :  { %v212_v31 = vmul.f32 %v360_v27, %v211_v28  ;;  %v209_v32 = vsel %vm208_vm4, %v358_v21, %v205_v30 }
 0x12b   :  { %v220_v33 = vmul.f32 %v209_v32, %v196_v29 }
 0x12c   :  { %v213_v34 = vmul.f32 0.5, %v212_v31 }
 0x12d   :  { %232 = vperm.xlu2 %354, %v220_v33  }
 0x12e   :  { %v214_v35 = vsub.f32 1.5, %v213_v34 }
 0x130   :  { %v215_v37 = vmul.f32 %v360_v27, %v214_v35  ;;  %v258_v6 = vpop.permute.xlu1 %257 }
 0x132   :  { %v219_v38 = vsel %vm218_vm7, %v360_v27, %v215_v37 }
 0x133   :  { %v221_v41 = vmul.f32 %v219_v38, %v197_v36 }
 0x135   :  { %237 = vperm.xlu2 %354, %v221_v41  }
 0x187   :  { %v233_v48 = vpop.permute.xlu2 %232 }
 0x188   :  { %v240_v52 = vmul.f32 %v233_v48, %v222_v42  ;;  %v241_v53 = vmul.f32 %v233_v48, %v223_v43  ;;  %v242_v54 = vmul.f32 %v233_v48, %v224_v44  ;;  %v243_v55 = vmul.f32 %v233_v48, %v225_v47 }
 0x18a   :  { %v260_v56 = vadd.f32 %v253_v49, %v240_v52  ;;  %v261_v57 = vadd.f32 %v253_v49, %v241_v53  ;;  %v262_v60 = vadd.f32 %v253_v49, %v242_v54  ;;  %v263_v61 = vadd.f32 %v253_v49, %v243_v55 }
 0x18c   :  { %vm268_vm8 = vcmp.ge.f32.partialorder %v260_v56, 0.0  ;;  %vm269_vm9 = vcmp.ge.f32.partialorder %v261_v57, 0.0  ;;  %vm270_vm10 = vcmp.ge.f32.partialorder %v262_v60, 0.0  ;;  %vm271_vm11 = vcmp.ge.f32.partialorder %v263_v61, 0.0 }
 0x18d   :  { %v276_v39 = vmul.f32 0.3, %v260_v56  ;;  %v277_v40 = vmul.f32 0.3, %v261_v57  ;;  %v278_v62 = vmul.f32 0.3, %v262_v60 }
 0x18e   :  { %v279_v45 = vmul.f32 0.3, %v263_v61 }
 0x18f   :  { %v284_v1 = vsel %vm268_vm8, %v260_v56, %v276_v39  ;;  %v285_v2 = vsel %vm269_vm9, %v261_v57, %v277_v40  ;;  %v286_v3 = vsel %vm270_vm10, %v262_v60, %v278_v62  ;;  %v238_v5 = vpop.permute.xlu2 %237 }
 0x190   :  { %v287_v7 = vsel %vm271_vm11, %v263_v61, %v279_v45  ;;  %292 = vst [vmem:[%s544_s4] sm:$0xff] %v284_v1  ;;  %v244_v50 = vmul.f32 %v238_v5, %v226_v46  ;;  %v245_v8 = vmul.f32 %v238_v5, %v227_v63  ;;  %v246_v9 = vmul.f32 %v238_v5, %v228_v0 }
 0x191   :  { %293 = vst [vmem:[%s544_s4 + $0x8] sm:$0xff] %v285_v2  ;;  %v247_v51 = vmul.f32 %v238_v5, %v229_v4 }
 0x192   :  { %294 = vst [vmem:[%s544_s4 + $0x10] sm:$0xff] %v286_v3  ;;  %v264_v58 = vadd.f32 %v258_v6, %v244_v50  ;;  %v265_v59 = vadd.f32 %v258_v6, %v245_v8  ;;  %v266_v10 = vadd.f32 %v258_v6, %v246_v9 }
 0x193   :  { %295 = vst [vmem:[%s544_s4 + $0x18] sm:$0xff] %v287_v7  ;;  %v267_v11 = vadd.f32 %v258_v6, %v247_v51 }
 0x194   :  { %vm272_vm12 = vcmp.ge.f32.partialorder %v264_v58, 0.0  ;;  %vm273_vm13 = vcmp.ge.f32.partialorder %v265_v59, 0.0  ;;  %vm274_vm14 = vcmp.ge.f32.partialorder %v266_v10, 0.0  ;;  %v280_v12 = vmul.f32 0.3, %v264_v58 }
 0x195   :  { %vm275_vm15 = vcmp.ge.f32.partialorder %v267_v11, 0.0  ;;  %v281_v13 = vmul.f32 0.3, %v265_v59  ;;  %v282_v14 = vmul.f32 0.3, %v266_v10 }
 0x196   :  { %v283_v15 = vmul.f32 0.3, %v267_v11  ;;  %v288_v16 = vsel %vm272_vm12, %v264_v58, %v280_v12 }
 0x197   :  { %v289_v17 = vsel %vm273_vm13, %v265_v59, %v281_v13  ;;  %v290_v18 = vsel %vm274_vm14, %v266_v10, %v282_v14  ;;  %296 = vst [vmem:[%s544_s4 + $0x20] sm:$0xff] %v288_v16 }
 0x198   :  { %v291_v19 = vsel %vm275_vm15, %v267_v11, %v283_v15  ;;  %297 = vst [vmem:[%s544_s4 + $0x28] sm:$0xff] %v289_v17 }
 0x199   :  { %298 = vst [vmem:[%s544_s4 + $0x30] sm:$0xff] %v290_v18 }
 0x19a   :  { %299 = vst [vmem:[%s544_s4 + $0x38] sm:$0xff] %v291_v19 }

</bundles_post_ra>
